<compile_context>
chip_gen: v7x
topology: tpu7x:2x2x1
jax: 0.10.0
libtpu: 0.0.40
codegen_flags: <defaults>
</compile_context>

<pallas_src>
import math
from functools import partial

import jax
import jax.numpy as jnp
from jax import lax
from jax.experimental import pallas as pl
from jax.experimental.pallas import tpu as pltpu


def _se_kernel(x_ref, w1_ref, b1_ref, w2_ref, b2_ref, o_ref, *, inv_hw):
    # x_ref  : [Bblk, C, HWp]  (channels on sublanes, spatial on lanes)
    # w1_ref : [S, C]   fc1 weight, PyTorch [out, in] layout (no transpose)
    # b1_ref : [1, S]
    # w2_ref : [C, S]   fc2 weight, PyTorch [out, in] layout
    # b2_ref : [1, C]
    # o_ref  : [Bblk, C, HWp]
    bblk = x_ref.shape[0]
    x = x_ref[...]                                            # native dtype, no upcast

    # Squeeze: global average pool over the spatial (lane) axis, f32 accumulation.
    # Any zero-padded lanes contribute nothing; inv_hw uses the TRUE H*W.
    pooled = jnp.sum(x, axis=-1, dtype=jnp.float32) * inv_hw  # [Bblk, C]

    w1 = w1_ref[...].astype(jnp.float32)                      # [S, C]
    w2 = w2_ref[...].astype(jnp.float32)                      # [C, S]
    b1 = b1_ref[...].astype(jnp.float32)                      # [1, S]
    b2 = b2_ref[...].astype(jnp.float32)                      # [1, C]

    if bblk == 1:
        # Degenerate batch block: keep the tiny MLP on the VPU/XLU
        # (broadcast-multiply + lane reduce) rather than an N=1 MXU matvec.
        s1 = jnp.sum(w1 * pooled, axis=-1)[None, :] + b1      # [1, S]
        s1 = jnp.where(s1 > 0, s1, 0.01 * s1)                 # leaky_relu (slope 0.01)
        s2 = jnp.sum(w2 * s1, axis=-1)[None, :] + b2          # [1, C]
    else:
        # One real matmul per step: contract the channel axes of the PyTorch
        # [out, in] weights directly (A @ B.T form, MXU-native).
        dn = (((1,), (1,)), ((), ()))
        s1 = lax.dot_general(pooled, w1, dn,
                             preferred_element_type=jnp.float32) + b1   # [Bblk, S]
        s1 = jnp.where(s1 > 0, s1, 0.01 * s1)                 # leaky_relu (slope 0.01)
        s2 = lax.dot_general(s1, w2, dn,
                             preferred_element_type=jnp.float32) + b2   # [Bblk, C]

    # Sigmoid on a tiny (Bblk, C) tensor: exact form (approx reciprocal would
    # cost accuracy for zero measurable gain at this size).
    scale = 1.0 / (1.0 + jnp.exp(-s2))                        # [Bblk, C] f32

    # Rescale in the native dtype; lane-dense store.
    o_ref[...] = (x * scale[:, :, None].astype(x.dtype)).astype(o_ref.dtype)


def _vmem_budget_bytes():
    """Usable VMEM budget (~80% of physical) and the physical capacity."""
    try:
        phys = int(getattr(pltpu.get_tpu_info(), "vmem_capacity_bytes", 64 << 20))
    except Exception:
        phys = 64 << 20
    return int(phys * 0.8), phys


def _choose_bblk(B, per_elem_bytes, weight_bytes, budget, big_vmem):
    """Batch elements per block: ~1-2 MiB blocks, grid >= 2, fits VMEM, divides B."""
    target = (2 << 20) if big_vmem else (1 << 20)
    bblk = max(1, target // per_elem_bytes)
    if B >= 2:
        bblk = min(bblk, max(1, B // 2))      # keep >=2 grid steps for megacore
    # Double-buffered input + output blocks + weights + headroom must fit.
    fit = max(1, (budget - 2 * weight_bytes - (4 << 20)) // (4 * per_elem_bytes))
    bblk = int(max(1, min(bblk, fit, B)))
    while B % bblk != 0:                      # snap to a divisor (no ragged block)
        bblk -= 1
    return max(1, bblk)


@jax.jit
def se_block(x, w1, b1, w2, b2):
    """Pallas equivalent of SEblock.forward.

    x  : [B, C, H, W]
    w1 : [squeeze, C]   (fc1 1x1-conv weight with the trailing 1x1 dropped)
    b1 : [squeeze]
    w2 : [C, squeeze]   (fc2)
    b2 : [C]
    """
    B, C, H, W = x.shape
    S = w1.shape[0]
    HW = H * W

    # Lane-dense spatial axis: pad H*W up to a multiple of 128 so stores are
    # unmasked vst.  Pads are zeros; the pool divides by the true H*W.
    HWp = max(128, ((HW + 127) // 128) * 128)
    x3 = x.reshape(B, C, HW)
    if HWp != HW:
        # TODO(synk): for shapes far from a 128 multiple, a [B, HW, C] layout
        # (C on lanes) would avoid this pad copy; fine for typical SE stages.
        x3 = jnp.pad(x3, ((0, 0), (0, 0), (0, HWp - HW)))

    b1r = b1.reshape(1, S)
    b2r = b2.reshape(1, C)

    itemsize = jnp.dtype(x.dtype).itemsize
    per_elem = C * HWp * itemsize
    weight_bytes = (w1.size + w2.size + S + C) * jnp.dtype(w1.dtype).itemsize

    budget, phys = _vmem_budget_bytes()
    bblk = _choose_bblk(B, per_elem, weight_bytes, budget,
                        big_vmem=(phys >= (96 << 20)))
    n_steps = B // bblk

    # Request only what the double-buffered blocks + resident weights need.
    needed = 4 * bblk * per_elem + 2 * weight_bytes + (4 << 20)
    vmem_limit = int(min(budget, max(needed, 16 << 20)))

    kernel = partial(_se_kernel, inv_hw=1.0 / HW)

    out = pl.pallas_call(
        kernel,
        out_shape=jax.ShapeDtypeStruct((B, C, HWp), x.dtype),
        grid_spec=pltpu.PrefetchScalarGridSpec(
            num_scalar_prefetch=0,
            grid=(n_steps,),
            in_specs=[
                pl.BlockSpec((bblk, C, HWp), lambda b: (b, 0, 0)),  # x block
                pl.BlockSpec((S, C), lambda b: (0, 0)),             # fc1 weight (resident)
                pl.BlockSpec((1, S), lambda b: (0, 0)),             # fc1 bias
                pl.BlockSpec((C, S), lambda b: (0, 0)),             # fc2 weight (resident)
                pl.BlockSpec((1, C), lambda b: (0, 0)),             # fc2 bias
            ],
            out_specs=pl.BlockSpec((bblk, C, HWp), lambda b: (b, 0, 0)),
        ),
        compiler_params=pltpu.CompilerParams(
            dimension_semantics=("parallel",),   # batch blocks shard across TCs
            vmem_limit_bytes=vmem_limit,
        ),
    )(x3, w1, b1r, w2, b2r)

    if HWp != HW:
        out = out[:, :, :HW]
    return out.reshape(B, C, H, W)


def init_params(key, in_dim, dtype=jnp.float32):
    """Deterministic params matching nn.Conv2d(in, out, (1,1)) default init
    (kaiming_uniform with a=sqrt(5) -> U(-1/sqrt(fan_in), 1/sqrt(fan_in)))."""
    squeeze = in_dim // 16
    k1, k2, k3, k4 = jax.random.split(key, 4)
    bound1 = 1.0 / math.sqrt(in_dim)
    w1 = jax.random.uniform(k1, (squeeze, in_dim), dtype, -bound1, bound1)
    b1 = jax.random.uniform(k2, (squeeze,), dtype, -bound1, bound1)
    bound2 = 1.0 / math.sqrt(squeeze)
    w2 = jax.random.uniform(k3, (in_dim, squeeze), dtype, -bound2, bound2)
    b2 = jax.random.uniform(k4, (in_dim,), dtype, -bound2, bound2)
    return w1, b1, w2, b2


if __name__ == "__main__":
    key = jax.random.PRNGKey(0)
    kx, kp = jax.random.split(key)

    # in_dim must be >= 16 so squeeze = in_dim // 16 >= 1 (as the module implies).
    # B=8 exercises the multi-batch blocks (Bblk>1) and the 2-step parallel grid.
    B, C, H, W = 8, 64, 16, 16
    x = jax.random.normal(kx, (B, C, H, W), dtype=jnp.float32)
    w1, b1, w2, b2 = init_params(kp, C)

    y = se_block(x, w1, b1, w2, b2)
    y = jax.block_until_ready(y)

    # Pure-JAX reference (same math as the PyTorch forward).
    pooled = jnp.mean(x, axis=(2, 3))                    # adaptive_avg_pool2d -> [B, C]
    s1 = pooled @ w1.T + b1
    s1 = jnp.where(s1 > 0, s1, 0.01 * s1)                # leaky_relu_
    s2 = s1 @ w2.T + b2
    scale = jax.nn.sigmoid(s2)
    y_ref = x * scale[:, :, None, None]

    assert y.shape == x.shape
    assert jnp.allclose(y, y_ref, atol=1e-5, rtol=1e-5), float(jnp.max(jnp.abs(y - y_ref)))
    print("KERNEL_OK")
</pallas_src>

<mosaic_0001>
module attributes {stable_mosaic.version = 11 : i64} {
  func.func @_se_kernel(%arg0: i32, %arg1: memref<4x64x256xf32, #tpu.memory_space<vmem>>, %arg2: memref<4x64xf32, #tpu.memory_space<vmem>>, %arg3: memref<1x4xf32, #tpu.memory_space<vmem>>, %arg4: memref<64x4xf32, #tpu.memory_space<vmem>>, %arg5: memref<1x64xf32, #tpu.memory_space<vmem>>, %arg6: memref<4x64x256xf32, #tpu.memory_space<vmem>>) attributes {dimension_semantics = [#tpu.dimension_semantics<parallel>], iteration_bounds = array<i64: 2>, scalar_prefetch = 0 : i64, scratch_operands = 0 : i64, tpu.core_type = #tpu.core_type<tc>, window_params = [{transform_indices = @transform_0, window_bounds = array<i64: 4, 64, 256>}, {pipeline_mode = #tpu.pipeline_mode<synchronous>, transform_indices = @transform_1, window_bounds = array<i64: 4, 64>}, {pipeline_mode = #tpu.pipeline_mode<synchronous>, transform_indices = @transform_2, window_bounds = array<i64: 1, 4>}, {pipeline_mode = #tpu.pipeline_mode<synchronous>, transform_indices = @transform_3, window_bounds = array<i64: 64, 4>}, {pipeline_mode = #tpu.pipeline_mode<synchronous>, transform_indices = @transform_4, window_bounds = array<i64: 1, 64>}, {transform_indices = @transform_5, window_bounds = array<i64: 4, 64, 256>}]} {
    %c0 = arith.constant 0 : index
    %c0_0 = arith.constant 0 : index
    %c0_1 = arith.constant 0 : index
    %0 = vector.load %arg1[%c0, %c0_0, %c0_1] : memref<4x64x256xf32, #tpu.memory_space<vmem>>, vector<4x64x256xf32>
    %cst = arith.constant dense<0.000000e+00> : vector<4x64xf32>
    %1 = vector.multi_reduction <add>, %0, %cst [2] : vector<4x64x256xf32> to vector<4x64xf32>
    %cst_2 = arith.constant 3.906250e-03 : f32
    %2 = vector.broadcast %cst_2 : f32 to vector<4x64xf32>
    %3 = arith.mulf %1, %2 : vector<4x64xf32>
    %c0_3 = arith.constant 0 : index
    %c0_4 = arith.constant 0 : index
    %4 = vector.load %arg2[%c0_3, %c0_4] : memref<4x64xf32, #tpu.memory_space<vmem>>, vector<4x64xf32>
    %c0_5 = arith.constant 0 : index
    %c0_6 = arith.constant 0 : index
    %5 = vector.load %arg4[%c0_5, %c0_6] : memref<64x4xf32, #tpu.memory_space<vmem>>, vector<64x4xf32>
    %c0_7 = arith.constant 0 : index
    %c0_8 = arith.constant 0 : index
    %6 = vector.load %arg3[%c0_7, %c0_8] : memref<1x4xf32, #tpu.memory_space<vmem>>, vector<1x4xf32>
    %c0_9 = arith.constant 0 : index
    %c0_10 = arith.constant 0 : index
    %7 = vector.load %arg5[%c0_9, %c0_10] : memref<1x64xf32, #tpu.memory_space<vmem>>, vector<1x64xf32>
    %cst_11 = arith.constant dense<0.000000e+00> : vector<4x4xf32>
    %8 = tpu.matmul %3, %4, %cst_11 {dimension_numbers = #tpu.dot_dimension_numbers<[1], [1], [0], [0], [0, 0, 1, 0], [], []>} : vector<4x64xf32>, vector<4x64xf32>, vector<4x4xf32> -> vector<4x4xf32>
    %9 = vector.broadcast %6 : vector<1x4xf32> to vector<4x4xf32>
    %10 = arith.addf %8, %9 : vector<4x4xf32>
    %cst_12 = arith.constant 0.000000e+00 : f32
    %11 = vector.broadcast %cst_12 : f32 to vector<4x4xf32>
    %12 = arith.cmpf ogt, %10, %11 : vector<4x4xf32>
    %cst_13 = arith.constant 0.00999999977 : f32
    %13 = vector.broadcast %cst_13 : f32 to vector<4x4xf32>
    %14 = arith.mulf %13, %10 : vector<4x4xf32>
    %15 = arith.select %12, %10, %14 : vector<4x4xi1>, vector<4x4xf32>
    %cst_14 = arith.constant dense<0.000000e+00> : vector<4x64xf32>
    %16 = tpu.matmul %15, %5, %cst_14 {dimension_numbers = #tpu.dot_dimension_numbers<[1], [1], [0], [0], [0, 0, 1, 0], [], []>} : vector<4x4xf32>, vector<64x4xf32>, vector<4x64xf32> -> vector<4x64xf32>
    %17 = vector.broadcast %7 : vector<1x64xf32> to vector<4x64xf32>
    %18 = arith.addf %16, %17 : vector<4x64xf32>
    %cst_15 = arith.constant 0.000000e+00 : f32
    %19 = vector.broadcast %cst_15 : f32 to vector<4x64xf32>
    %20 = arith.subf %19, %18 : vector<4x64xf32>
    %21 = math.exp %20 : vector<4x64xf32>
    %cst_16 = arith.constant 1.000000e+00 : f32
    %22 = vector.broadcast %cst_16 : f32 to vector<4x64xf32>
    %23 = arith.addf %22, %21 : vector<4x64xf32>
    %cst_17 = arith.constant 1.000000e+00 : f32
    %24 = vector.broadcast %cst_17 : f32 to vector<4x64xf32>
    %25 = arith.divf %24, %23 : vector<4x64xf32>
    %26 = vector.shape_cast %25 : vector<4x64xf32> to vector<4x64x1xf32>
    %27 = vector.broadcast %26 : vector<4x64x1xf32> to vector<4x64x256xf32>
    %28 = arith.mulf %0, %27 : vector<4x64x256xf32>
    %c0_18 = arith.constant 0 : index
    %c0_19 = arith.constant 0 : index
    %c0_20 = arith.constant 0 : index
    %29 = vector.load %arg6[%c0_18, %c0_19, %c0_20] : memref<4x64x256xf32, #tpu.memory_space<vmem>>, vector<4x64x256xf32>
    tpu.vector_store %arg6[%c0_18, %c0_19, %c0_20], %28 {strides = array<i32>} : memref<4x64x256xf32, #tpu.memory_space<vmem>>, vector<4x64x256xf32>,
    return
  }
  func.func @transform_0(%arg0: i32) -> (i32, i32, i32) {
    %c0_i32 = arith.constant 0 : i32
    %c0_i32_0 = arith.constant 0 : i32
    %c0_i32_1 = arith.constant 0 : i32
    return %arg0, %c0_i32, %c0_i32_0 : i32, i32, i32
  }
  func.func @transform_1(%arg0: i32) -> (i32, i32) {
    %c0_i32 = arith.constant 0 : i32
    %c0_i32_0 = arith.constant 0 : i32
    %c0_i32_1 = arith.constant 0 : i32
    return %c0_i32, %c0_i32_0 : i32, i32
  }
  func.func @transform_2(%arg0: i32) -> (i32, i32) {
    %c0_i32 = arith.constant 0 : i32
    %c0_i32_0 = arith.constant 0 : i32
    %c0_i32_1 = arith.constant 0 : i32
    return %c0_i32, %c0_i32_0 : i32, i32
  }
  func.func @transform_3(%arg0: i32) -> (i32, i32) {
    %c0_i32 = arith.constant 0 : i32
    %c0_i32_0 = arith.constant 0 : i32
    %c0_i32_1 = arith.constant 0 : i32
    return %c0_i32, %c0_i32_0 : i32, i32
  }
  func.func @transform_4(%arg0: i32) -> (i32, i32) {
    %c0_i32 = arith.constant 0 : i32
    %c0_i32_0 = arith.constant 0 : i32
    %c0_i32_1 = arith.constant 0 : i32
    return %c0_i32, %c0_i32_0 : i32, i32
  }
  func.func @transform_5(%arg0: i32) -> (i32, i32, i32) {
    %c0_i32 = arith.constant 0 : i32
    %c0_i32_0 = arith.constant 0 : i32
    %c0_i32_1 = arith.constant 0 : i32
    return %arg0, %c0_i32, %c0_i32_0 : i32, i32, i32
  }
}

</mosaic_0001>

<bundles_post_ra>
// kernel: se_block.1
= control target key start
LH: loop header
LB: loop body
LE: loop exit
PB: predicated region body
PF: predicated region fallthrough
CT: control target
= control target key end

     0   :  { %s1302_s18 = smov 0   ;;  %s1874_s0 = inlined_call_operand.vmem [shape: f32[8,64,256], index: 0, kind: input, shape index: {}]   ;;  %s1875_s1 = inlined_call_operand.vmem [shape: f32[4,64], index: 1, kind: input, shape index: {}]   ;;  %s1876_s2 = inlined_call_operand.vmem [shape: f32[1,4], index: 2, kind: input, shape index: {}]   ;;  %s1877_s3 = inlined_call_operand.vmem [shape: f32[64,4], index: 3, kind: input, shape index: {}]   ;;  %s1878_s4 = inlined_call_operand.vmem [shape: f32[1,64], index: 4, kind: input, shape index: {}]   ;;  %s1879_s5 = inlined_call_operand.vmem [shape: f32[8,64,256], index: 5, kind: output, shape index: {}]  }
   0x1 LB: > { %s1167_s19 = sadd.s32 4294967295, %s1267_s18   ;;  %p1171_p0 = scmp.ge.s32.totalorder %s1267_s18, 1  ;;  %s1267_s18 = sphi %s1302_s18, %s15_s18  }
   0x2   : > { %p189_p1 = scmp.lt.s32.totalorder %s1267_s18, 3 }
   0x4   : > { %p190_p2 = pnand %p1171_p0, %p189_p1 }
   0x6   : > { %193 = sbr.rel (%p190_p2) target bundleno = 875 (0x36b), region = 40 }
   0xd   : > { %s1172_s20 = sshll.u32 %s1167_s19, 2  ;;  %vm652_vm0 = vcmask 523264   ;;  %vm1270_vm1 = vmmov 0   ;;  %vm737_vm2 = vcmask 31744   ;;  %vm485_vm4 = vcmask 130112  }
   0xe   : > { %p220_p3 = scmp.lt.s32.totalorder %s1172_s20, 7  ;;  %vm1588_vm3 = vmpackc.low %vm737_vm2, %vm737_vm2  ;;  %vm492_vm5 = vcmask 195712   ;;  %vm499_vm6 = vcmask 261312   ;;  %vm506_vm7 = vcmask 326912   ;;  %vm513_vm8 = vcmask 392512  }
   0xf   : > { %vm520_vm9 = vcmask 458112   ;;  %vm527_vm10 = vcmask 523712   ;;  %vm646_vm11 = vcmask 1041409   ;;  %vm648_vm12 = vcmask 1042434  }
  0x10   : > { %s2018_s20 = smov (!%p220_p3, %s1172_s20), 7  ;;  %vm650_vm13 = vcmask 1043459  }
  0x11   : > { %s1193_s21 = sshll.u32 %s2018_s20, 7 }
  0x12   : > { %s1318_s24 = scalar_lea.vmem %s1874_s0, %s1193_s21  ;;  %s1741_s27 = scalar_lea.vmem %s1879_s5, %s1193_s21 }
  0x13   : > { %v1321_v0 = vld [vmem:[%s1318_s24 + $0x80] sm:$0xff]  ;;  %v1324_v1 = vld [vmem:[%s1318_s24 + $0x88] sm:$0xff]  ;;  %v1335_v5 = vld [vmem:[%s1318_s24 + $0x90] sm:$0xff] }
  0x14   : > { %v1327_v2 = vld [vmem:[%s1318_s24] sm:$0xff]  ;;  %v321_v3 = vadd.f32 %v1324_v1, %v1321_v0  ;;  %v1332_v4 = vld [vmem:[%s1318_s24 + $0x8] sm:$0xff]  ;;  %1925 = vst [vmem:[#allocation2_spill] sm:$0xff] %v1335_v5  ;;  %v1338_v6 = vld [vmem:[%s1318_s24 + $0x98] sm:$0xff] }
  0x15   : > { %1926 = vst [vmem:[#allocation3_spill] sm:$0xff] %v1338_v6  ;;  %v297_v7 = vadd.f32 %v1332_v4, %v1327_v2  ;;  %v1343_v8 = vld [vmem:[%s1318_s24 + $0x10] sm:$0xff]  ;;  %v1346_v9 = vld [vmem:[%s1318_s24 + $0x18] sm:$0xff]  ;;  %v324_v10 = vadd.f32 %v1338_v6, %v1335_v5  ;;  %v1353_v12 = vld [vmem:[%s1318_s24 + $0xa0] sm:$0xff] }
  0x16   : > { %322 = vadd.xlane.f32.xlu1 %v321_v3  ;;  %v300_v11 = vadd.f32 %v1346_v9, %v1343_v8  ;;  %v1356_v13 = vld [vmem:[%s1318_s24 + $0xa8] sm:$0xff]  ;;  %v1359_v14 = vld [vmem:[%s1318_s24 + $0x20] sm:$0xff]  ;;  %v1369_v18 = vld [vmem:[%s1318_s24 + $0x110] sm:$0xff] }
  0x17   : > { %298 = vadd.xlane.f32.xlu0 %v297_v7  ;;  %1927 = vst [vmem:[#allocation4_spill] sm:$0xff] %v1356_v13  ;;  %v1362_v15 = vld [vmem:[%s1318_s24 + $0x28] sm:$0xff]  ;;  %v327_v16 = vadd.f32 %v1356_v13, %v1353_v12  ;;  %1928 = vst [vmem:[#allocation5_spill] sm:$0xff] %v1369_v18  ;;  %v1372_v19 = vld [vmem:[%s1318_s24 + $0x118] sm:$0xff] }
  0x18   : > { %v303_v17 = vadd.f32 %v1362_v15, %v1359_v14  ;;  %1929 = vst [vmem:[#allocation6_spill] sm:$0xff] %v1372_v19  ;;  %v1375_v20 = vld [vmem:[%s1318_s24 + $0x100] sm:$0xff]  ;;  %v1378_v21 = vld [vmem:[%s1318_s24 + $0x108] sm:$0xff]  ;;  %v348_v22 = vadd.f32 %v1372_v19, %v1369_v18  ;;  %v1385_v24 = vld [vmem:[%s1318_s24 + $0xb0] sm:$0xff] }
  0x19   : > { %1930 = vst [vmem:[#allocation7_spill] sm:$0xff] %v1375_v20  ;;  %1931 = vst [vmem:[#allocation8_spill] sm:$0xff] %v1378_v21  ;;  %v345_v23 = vadd.f32 %v1378_v21, %v1375_v20  ;;  %v1388_v25 = vld [vmem:[%s1318_s24 + $0xb8] sm:$0xff]  ;;  %v1391_v26 = vld [vmem:[%s1318_s24 + $0x30] sm:$0xff] }
  0x1a   : > { %325 = vadd.xlane.f32.xlu1 %v324_v10  ;;  %1932 = vst [vmem:[#allocation9_spill] sm:$0xff] %v1385_v24  ;;  %1933 = vst [vmem:[#allocation10_spill] sm:$0xff] %v1388_v25  ;;  %v1394_v27 = vld [vmem:[%s1318_s24 + $0x38] sm:$0xff]  ;;  %v330_v28 = vadd.f32 %v1388_v25, %v1385_v24  ;;  %v1401_v30 = vld [vmem:[%s1318_s24 + $0x180] sm:$0xff] }
  0x1b   : > { %301 = vadd.xlane.f32.xlu0 %v300_v11  ;;  %v306_v29 = vadd.f32 %v1394_v27, %v1391_v26  ;;  %1934 = vst [vmem:[#allocation11_spill] sm:$0xff] %v1401_v30  ;;  %v1404_v31 = vld [vmem:[%s1318_s24 + $0x188] sm:$0xff]  ;;  %v1407_v32 = vld [vmem:[%s1318_s24 + $0x120] sm:$0xff]  ;;  %v1423_v38 = vld [vmem:[%s1318_s24 + $0x190] sm:$0xff] }
  0x1c   : > { %1935 = vst [vmem:[#allocation12_spill] sm:$0xff] %v1404_v31  ;;  %1936 = vst [vmem:[#allocation13_spill] sm:$0xff] %v1407_v32  ;;  %v1410_v33 = vld [vmem:[%s1318_s24 + $0x128] sm:$0xff]  ;;  %v369_v34 = vadd.f32 %v1404_v31, %v1401_v30  ;;  %v1417_v36 = vld [vmem:[%s1318_s24 + $0x40] sm:$0xff] }
  0x1d   : > { %1937 = vst [vmem:[#allocation14_spill] sm:$0xff] %v1410_v33  ;;  %v351_v35 = vadd.f32 %v1410_v33, %v1407_v32  ;;  %v1420_v37 = vld [vmem:[%s1318_s24 + $0x48] sm:$0xff]  ;;  %1938 = vst [vmem:[#allocation15_spill] sm:$0xff] %v1423_v38  ;;  %v1426_v39 = vld [vmem:[%s1318_s24 + $0x198] sm:$0xff] }
  0x1e   : > { %328 = vadd.xlane.f32.xlu1 %v327_v16  ;;  %1939 = vst [vmem:[#allocation16_spill] sm:$0xff] %v1426_v39  ;;  %v309_v40 = vadd.f32 %v1420_v37, %v1417_v36  ;;  %v372_v41 = vadd.f32 %v1426_v39, %v1423_v38  ;;  %v1433_v42 = vld [vmem:[%s1318_s24 + $0x130] sm:$0xff]  ;;  %v1436_v43 = vld [vmem:[%s1318_s24 + $0x138] sm:$0xff]  ;;  %v1439_v44 = vld [vmem:[%s1318_s24 + $0xc0] sm:$0xff] }
  0x1f   : > { %304 = vadd.xlane.f32.xlu0 %v303_v17  ;;  %1940 = vst [vmem:[#allocation17_spill] sm:$0xff] %v1433_v42  ;;  %1941 = vst [vmem:[#allocation18_spill] sm:$0xff] %v1436_v43  ;;  %v1442_v45 = vld [vmem:[%s1318_s24 + $0xc8] sm:$0xff]  ;;  %v354_v46 = vadd.f32 %v1436_v43, %v1433_v42  ;;  %v1449_v48 = vld [vmem:[%s1318_s24 + $0x50] sm:$0xff] }
  0x20   : > { %1942 = vst [vmem:[#allocation19_spill] sm:$0xff] %v1439_v44  ;;  %1943 = vst [vmem:[#allocation20_spill] sm:$0xff] %v1442_v45  ;;  %v333_v47 = vadd.f32 %v1442_v45, %v1439_v44  ;;  %v1452_v49 = vld [vmem:[%s1318_s24 + $0x58] sm:$0xff]  ;;  %v1455_v50 = vld [vmem:[%s1318_s24 + $0x1a0] sm:$0xff] }
  0x21   : > { %1944 = vst [vmem:[#allocation21_spill] sm:$0xff] %v1455_v50  ;;  %v1458_v51 = vld [vmem:[%s1318_s24 + $0x1a8] sm:$0xff]  ;;  %v312_v52 = vadd.f32 %v1452_v49, %v1449_v48  ;;  %v1465_v54 = vld [vmem:[%s1318_s24 + $0x140] sm:$0xff]  ;;  %v1471_v56 = vld [vmem:[%s1318_s24 + $0xd0] sm:$0xff] }
  0x22   : > { %349 = vadd.xlane.f32.xlu1 %v348_v22  ;;  %1945 = vst [vmem:[#allocation22_spill] sm:$0xff] %v1458_v51  ;;  %v375_v53 = vadd.f32 %v1458_v51, %v1455_v50  ;;  %1946 = vst [vmem:[#allocation23_spill] sm:$0xff] %v1465_v54  ;;  %v1468_v55 = vld [vmem:[%s1318_s24 + $0x148] sm:$0xff]  ;;  %v1474_v57 = vld [vmem:[%s1318_s24 + $0xd8] sm:$0xff] }
  0x23   : > { %346 = vadd.xlane.f32.xlu0 %v345_v23  ;;  %1947 = vst [vmem:[#allocation24_spill] sm:$0xff] %v1468_v55  ;;  %1948 = vst [vmem:[#allocation25_spill] sm:$0xff] %v1471_v56  ;;  %v357_v58 = vadd.f32 %v1468_v55, %v1465_v54  ;;  %v336_v59 = vadd.f32 %v1474_v57, %v1471_v56  ;;  %v1481_v60 = vld [vmem:[%s1318_s24 + $0x60] sm:$0xff]  ;;  %v1484_v61 = vld [vmem:[%s1318_s24 + $0x68] sm:$0xff] }
  0x24   : > { %1949 = vst [vmem:[#allocation26_spill] sm:$0xff] %v1474_v57  ;;  %v1487_v62 = vld [vmem:[%s1318_s24 + $0x1b0] sm:$0xff]  ;;  %v1490_v63 = vld [vmem:[%s1318_s24 + $0x1b8] sm:$0xff]  ;;  %v315_v3 = vadd.f32 %v1484_v61, %v1481_v60  ;;  %v1503_v16 = vld [vmem:[%s1318_s24 + $0xe0] sm:$0xff] }
  0x25   : > { %1950 = vst [vmem:[#allocation27_spill] sm:$0xff] %v1487_v62  ;;  %1951 = vst [vmem:[#allocation28_spill] sm:$0xff] %v1490_v63  ;;  %v378_v7 = vadd.f32 %v1490_v63, %v1487_v62  ;;  %v1497_v10 = vld [vmem:[%s1318_s24 + $0x150] sm:$0xff]  ;;  %v1500_v11 = vld [vmem:[%s1318_s24 + $0x158] sm:$0xff] }
  0x26   : > { %331 = vadd.xlane.f32.xlu1 %v330_v28  ;;  %1952 = vst [vmem:[#allocation29_spill] sm:$0xff] %v1497_v10  ;;  %1953 = vst [vmem:[#allocation30_spill] sm:$0xff] %v1500_v11  ;;  %v1506_v17 = vld [vmem:[%s1318_s24 + $0xe8] sm:$0xff]  ;;  %v360_v22 = vadd.f32 %v1500_v11, %v1497_v10  ;;  %v1513_v28 = vld [vmem:[%s1318_s24 + $0x70] sm:$0xff]  ;;  %v474_v10 = vlaneseq }
  0x27   : > { %307 = vadd.xlane.f32.xlu0 %v306_v29  ;;  %1954 = vst [vmem:[#allocation31_spill] sm:$0xff] %v1503_v16  ;;  %1955 = vst [vmem:[#allocation32_spill] sm:$0xff] %v1506_v17  ;;  %v339_v23 = vadd.f32 %v1506_v17, %v1503_v16  ;;  %v1516_v29 = vld [vmem:[%s1318_s24 + $0x78] sm:$0xff] }
  0x28   : > { %v1564_v62 = vld [vmem:[%s1318_s24 + $0x1f8] sm:$0xff] }
  0x29   : > { %1967 = vst [vmem:[#allocation44_spill] sm:$0xff] %v1564_v62 }
  0x2a   : > { %370 = vadd.xlane.f32.xlu1 %v369_v34  ;;  %v1519_v34 = vld [vmem:[%s1318_s24 + $0x1c0] sm:$0xff] }
  0x2b   : > { %352 = vadd.xlane.f32.xlu0 %v351_v35  ;;  %1956 = vst [vmem:[#allocation33_spill] sm:$0xff] %v1519_v34  ;;  %v1522_v35 = vld [vmem:[%s1318_s24 + $0x1c8] sm:$0xff] }
  0x2c   : > { %1957 = vst [vmem:[#allocation34_spill] sm:$0xff] %v1522_v35 }
  0x2e   : > { %310 = vadd.xlane.f32.xlu1 %v309_v40  ;;  %v318_v40 = vadd.f32 %v1516_v29, %v1513_v28 }
  0x2f   : > { %373 = vadd.xlane.f32.xlu0 %v372_v41  ;;  %v381_v41 = vadd.f32 %v1522_v35, %v1519_v34  ;;  %v1567_v35 = vld [vmem:[%s1318_s24 + $0x1e0] sm:$0xff]  ;;  %v1570_v34 = vld [vmem:[%s1318_s24 + $0x1e8] sm:$0xff] }
  0x30   : > { %1968 = vst [vmem:[#allocation45_spill] sm:$0xff] %v1567_v35  ;;  %1969 = vst [vmem:[#allocation46_spill] sm:$0xff] %v1570_v34 }
  0x32   : > { %355 = vadd.xlane.f32.xlu1 %v354_v46  ;;  %v1529_v46 = vld [vmem:[%s1318_s24 + $0x160] sm:$0xff] }
  0x33   : > { %334 = vadd.xlane.f32.xlu0 %v333_v47  ;;  %1958 = vst [vmem:[#allocation35_spill] sm:$0xff] %v1529_v46  ;;  %v1532_v47 = vld [vmem:[%s1318_s24 + $0x168] sm:$0xff] }
  0x34   : > { %1959 = vst [vmem:[#allocation36_spill] sm:$0xff] %v1532_v47 }
  0x36   : > { %313 = vadd.xlane.f32.xlu1 %v312_v52  ;;  %v1535_v52 = vld [vmem:[%s1318_s24 + $0xf0] sm:$0xff] }
  0x37   : > { %376 = vadd.xlane.f32.xlu0 %v375_v53  ;;  %1960 = vst [vmem:[#allocation37_spill] sm:$0xff] %v1535_v52  ;;  %v1538_v53 = vld [vmem:[%s1318_s24 + $0xf8] sm:$0xff] }
  0x38   : > { %1961 = vst [vmem:[#allocation38_spill] sm:$0xff] %v1538_v53 }
  0x3a   : > { %358 = vadd.xlane.f32.xlu1 %v357_v58  ;;  %v363_v58 = vadd.f32 %v1532_v47, %v1529_v46  ;;  %v1622_v47 = vshrl.u32 %v474_v10, 7 }
  0x3b   : > { %337 = vadd.xlane.f32.xlu0 %v336_v59  ;;  %v342_v59 = vadd.f32 %v1538_v53, %v1535_v52 }
  0x3e   : > { %316 = vadd.xlane.f32.xlu1 %v315_v3  ;;  %v1545_v3 = vld [vmem:[%s1318_s24 + $0x170] sm:$0xff] }
  0x3f   : > { %379 = vadd.xlane.f32.xlu0 %v378_v7  ;;  %1962 = vst [vmem:[#allocation39_spill] sm:$0xff] %v1545_v3  ;;  %v1548_v7 = vld [vmem:[%s1318_s24 + $0x178] sm:$0xff] }
  0x40   : > { %1963 = vst [vmem:[#allocation40_spill] sm:$0xff] %v1548_v7  ;;  %v366_v63 = vadd.f32 %v1548_v7, %v1545_v3 }
  0x42   : > { %361 = vadd.xlane.f32.xlu1 %v360_v22  ;;  %v1551_v22 = vld [vmem:[%s1318_s24 + $0x1d0] sm:$0xff] }
  0x43   : > { %340 = vadd.xlane.f32.xlu0 %v339_v23  ;;  %1964 = vst [vmem:[#allocation41_spill] sm:$0xff] %v1551_v22  ;;  %v1554_v23 = vld [vmem:[%s1318_s24 + $0x1d8] sm:$0xff] }
  0x44   : > { %1965 = vst [vmem:[#allocation42_spill] sm:$0xff] %v1554_v23 }
  0x46   : > { %319 = vadd.xlane.f32.xlu1 %v318_v40  ;;  %v384_v40 = vadd.f32 %v1554_v23, %v1551_v22  ;;  %v425_v23 = vld [vmem:[%s1875_s1] sm:$0xf] }
  0x47   : > { %382 = vadd.xlane.f32.xlu0 %v381_v41  ;;  %v1561_v41 = vld [vmem:[%s1318_s24 + $0x1f0] sm:$0xff] }
  0x48   : > { %1966 = vst [vmem:[#allocation43_spill] sm:$0xff] %v1561_v41  ;;  %v390_v39 = vadd.f32 %v1564_v62, %v1561_v41  ;;  %v475_v62 = vand.u32 127, %v474_v10 }
  0x4a   : > { %364 = vadd.xlane.f32.xlu1 %v363_v58  ;;  %v387_v58 = vadd.f32 %v1570_v34, %v1567_v35  ;;  %v480_v46 = vadd.s32 4294967288, %v475_v62  ;;  %v487_v43 = vadd.s32 4294967280, %v475_v62  ;;  %v494_v55 = vadd.s32 4294967272, %v475_v62 }
  0x4b   : > { %343 = vadd.xlane.f32.xlu0 %v342_v59  ;;  %v1269_v59 = vmov 0.0   ;;  %v501_v54 = vadd.s32 4294967264, %v475_v62  ;;  %v1629_v18 = vsub.s32 %v475_v62, %v1622_v47  ;;  %v508_v10 = vadd.s32 4294967256, %v475_v62 }
  0x4c   : > { %1206 = vmatprep.subr.mxu0 %v1269_v59  ;;  %1208 = vmatprep.mubr.msk.f32.mxu0 %vm1270_vm1, %v1269_v59  ;;  %v1632_v33 = vsub.s32 %v480_v46, %v1622_v47  ;;  %v1635_v32 = vsub.s32 %v487_v43, %v1622_v47  ;;  %v515_v53 = vadd.s32 4294967248, %v475_v62  ;;  %v1640_v20 = vsub.s32 %v494_v55, %v1622_v47 }
  0x4d   : > { %1207 = vmatpush3.xpose.msk.msra.mxu0 %vm652_vm0, %v425_v23  ;;  %1227 = vmatprep.mubr.msk.f32.mxu1 %vm1270_vm1, %v1269_v59  ;;  %v428_v23 = vld [vmem:[%s1877_s3 + $0x10] sm:$0xff]  ;;  %v429_v59 = vld [vmem:[%s1877_s3 + $0x18] sm:$0xff]  ;;  %v1643_v57 = vsub.s32 %v501_v54, %v1622_v47 }
  0x4e   : > { %367 = vadd.xlane.f32.xlu1 %v366_v63  ;;  %v426_v63 = vld [vmem:[%s1877_s3] sm:$0xff]  ;;  %v1235_v41 = vpack.c.bf16 %v429_v59, %v428_v23  ;;  %v432_v23 = vld [vmem:[%s1877_s3 + $0x30] sm:$0xff]  ;;  %v1651_v55 = vsub.s32 %v515_v53, %v1622_v47 }
  0x4f   : > { %385 = vadd.xlane.f32.xlu0 %v384_v40  ;;  %v1271_v40 = vmov 0.0|0.0  }
  0x50   : > { %1230 = vmatprep.subr.bf16.mxu1 %v1271_v40 }
  0x52   : > { %391 = vadd.xlane.f32.xlu1 %v390_v39  ;;  %v427_v39 = vld [vmem:[%s1877_s3 + $0x8] sm:$0xff] }
  0x53   : > { %388 = vadd.xlane.f32.xlu0 %v387_v58  ;;  %v1231_v58 = vpack.c.bf16 %v427_v39, %v426_v63  ;;  %v430_v63 = vld [vmem:[%s1877_s3 + $0x20] sm:$0xff]  ;;  %v431_v39 = vld [vmem:[%s1877_s3 + $0x28] sm:$0xff] }
  0x55   : > { %1233 = vmatpush3.bf16.xpose.msk.msra.mxu1 %vm1588_vm3, %v1231_v58  ;;  %v1239_v58 = vpack.c.bf16 %v431_v39, %v430_v63 }
  0x56   : > { %1234 = vmatprep.subr.bf16.mxu1 %v1271_v40 }
  0x5d   : > { %1237 = vmatpush3.bf16.xpose.msk.msra.mxu1 %vm1588_vm3, %v1235_v41  ;;  %v433_v41 = vld [vmem:[%s1877_s3 + $0x38] sm:$0xff] }
  0x5e   : > { %1238 = vmatprep.subr.bf16.mxu1 %v1271_v40  ;;  %v1243_v59 = vpack.c.bf16 %v433_v41, %v432_v23 }
  0x65   : > { %1241 = vmatpush3.bf16.xpose.msk.msra.mxu1 %vm1588_vm3, %v1239_v58 }
  0x66   : > { %1242 = vmatprep.subr.bf16.mxu1 %v1271_v40 }
  0x6d   : > { %1245 = vmatpush3.bf16.xpose.msk.msra.mxu1 %vm1588_vm3, %v1243_v59 }
  0xa3   : > { %v323_v22 = vpop.xlane.xlu1 %322 }
  0xa4   : > { %v299_v34 = vpop.xlane.xlu0 %298  ;;  %v401_v46 = vmul.f32 0.00390625, %v323_v22 }
  0xa5   : > { %v393_v44 = vmul.f32 0.00390625, %v299_v34 }
  0xa7   : > { %v326_v35 = vpop.xlane.xlu1 %325 }
  0xa8   : > { %v302_v63 = vpop.xlane.xlu0 %301  ;;  %v402_v21 = vmul.f32 0.00390625, %v326_v35  ;;  %v1648_v35 = vsub.s32 %v508_v10, %v1622_v47 }
  0xa9   : > { %v394_v17 = vmul.f32 0.00390625, %v302_v63 }
  0xaa   : > { %v536_v5 = vrot.slane %v402_v21, %v1632_v33  ;;  %v479_v21 = vrot.slane %v393_v44, %v1629_v18 }
  0xab   : > { %v329_v39 = vpop.xlane.xlu1 %328 }
  0xac   : > { %v305_v38 = vpop.xlane.xlu0 %304  ;;  %v403_v16 = vmul.f32 0.00390625, %v329_v39  ;;  %v522_v39 = vadd.s32 4294967240, %v475_v62 }
  0xad   : > { %v395_v43 = vmul.f32 0.00390625, %v305_v38  ;;  %v532_v38 = vrot.slane %v401_v46, %v1629_v18 }
  0xaf   : > { %v350_v58 = vpop.xlane.xlu1 %349  ;;  %v491_v34 = vrot.slane %v395_v43, %v1635_v32 }
  0xb0   : > { %v347_v40 = vpop.xlane.xlu0 %346  ;;  %v410_v25 = vmul.f32 0.00390625, %v350_v58  ;;  %v484_v58 = vrot.slane %v394_v17, %v1632_v33  ;;  %v537_v17 = vsel %vm485_vm4, %v536_v5, %v532_v38 }
  0xb1   : > { %v409_v24 = vmul.f32 0.00390625, %v347_v40 }
  0xb2   : > { %v575_v40 = vrot.slane %v410_v25, %v1632_v33 }
  0xb3   : > { %v332_v51 = vpop.xlane.xlu1 %331  ;;  %v571_v53 = vrot.slane %v409_v24, %v1629_v18  ;;  %v486_v24 = vsel %vm485_vm4, %v484_v58, %v479_v21 }
  0xb4   : > { %v308_v50 = vpop.xlane.xlu0 %307  ;;  %v404_v45 = vmul.f32 0.00390625, %v332_v51  ;;  %v541_v51 = vrot.slane %v403_v16, %v1635_v32 }
  0xb5   : > { %v396_v6 = vmul.f32 0.00390625, %v308_v50 }
  0xb6   : > { %v546_v10 = vrot.slane %v404_v45, %v1640_v20  ;;  %v542_v45 = vsel %vm492_vm5, %v541_v51, %v537_v17 }
  0xb7   : > { %v371_v7 = vpop.xlane.xlu1 %370 }
  0xb8   : > { %v353_v3 = vpop.xlane.xlu0 %352  ;;  %v547_v5 = vsel %vm499_vm6, %v546_v10, %v542_v45 }
  0xb9   : > { %v411_v13 = vmul.f32 0.00390625, %v353_v3  ;;  %v417_v3 = vmul.f32 0.00390625, %v371_v7  ;;  %v576_v7 = vsel %vm485_vm4, %v575_v40, %v571_v53 }
  0xbb   : > { %v311_v31 = vpop.xlane.xlu1 %310 }
  0xbc   : > { %v374_v30 = vpop.xlane.xlu0 %373  ;;  %v397_v22 = vmul.f32 0.00390625, %v311_v31  ;;  %v498_v31 = vrot.slane %v396_v6, %v1640_v20  ;;  %v1670_v6 = vsub.s32 %v522_v39, %v1622_v47 }
  0xbd   : > { %v418_v50 = vmul.f32 0.00390625, %v374_v30  ;;  %v580_v30 = vrot.slane %v411_v13, %v1635_v32 }
  0xbe   : > { %v505_v16 = vrot.slane %v397_v22, %v1643_v57  ;;  %v610_v22 = vrot.slane %v417_v3, %v1629_v18 }
  0xbf   : > { %v356_v11 = vpop.xlane.xlu1 %355  ;;  %v614_v44 = vrot.slane %v418_v50, %v1632_v33  ;;  %v581_v39 = vsel %vm492_vm5, %v580_v30, %v576_v7 }
  0xc0   : > { %v335_v23 = vpop.xlane.xlu0 %334  ;;  %v412_v62 = vmul.f32 0.00390625, %v356_v11  ;;  %v493_v11 = vsel %vm492_vm5, %v491_v34, %v486_v24 }
  0xc1   : > { %v405_v43 = vmul.f32 0.00390625, %v335_v23  ;;  %v500_v23 = vsel %vm499_vm6, %v498_v31, %v493_v11 }
  0xc2   : > { %v585_v38 = vrot.slane %v412_v62, %v1640_v20  ;;  %v507_v51 = vsel %vm506_vm7, %v505_v16, %v500_v23 }
  0xc3   : > { %v1618_v41 = vpop.xlane.xlu1 %313  ;;  %v551_v50 = vrot.slane %v405_v43, %v1643_v57 }
  0xc4   : > { %v1620_v59 = vpop.xlane.xlu0 %376  ;;  %v398_v13 = vmul.f32 0.00390625, %v1618_v41  ;;  %v615_v41 = vsel %vm485_vm4, %v614_v44, %v610_v22  ;;  %v586_v62 = vsel %vm499_vm6, %v585_v38, %v581_v39 }
  0xc5   : > { %v419_v53 = vmul.f32 0.00390625, %v1620_v59  ;;  %v552_v59 = vsel %vm506_vm7, %v551_v50, %v547_v5 }
  0xc7   : > { %v1624_v42 = vpop.xlane.xlu1 %358 }
  0xc8   : > { %v1626_v19 = vpop.xlane.xlu0 %337  ;;  %v413_v58 = vmul.f32 0.00390625, %v1624_v42  ;;  %v512_v42 = vrot.slane %v398_v13, %v1648_v35 }
  0xc9   : > { %v406_v34 = vmul.f32 0.00390625, %v1626_v19 }
  0xca   : > { %v590_v19 = vrot.slane %v413_v58, %v1643_v57  ;;  %v514_v7 = vsel %vm513_vm8, %v512_v42, %v507_v51 }
  0xcb   : > { %v1637_v52 = vpop.xlane.xlu1 %316 }
  0xcc   : > { %v1645_v56 = vpop.xlane.xlu0 %379  ;;  %v399_v17 = vmul.f32 0.00390625, %v1637_v52  ;;  %v591_v13 = vsel %vm506_vm7, %v590_v19, %v586_v62 }
  0xcd   : > { %v420_v21 = vmul.f32 0.00390625, %v1645_v56  ;;  %v619_v56 = vrot.slane %v419_v53, %v1635_v32 }
  0xcf   : > { %v362_v54 = vpop.xlane.xlu1 %361  ;;  %v624_v52 = vrot.slane %v420_v21, %v1640_v20  ;;  %v620_v51 = vsel %vm492_vm5, %v619_v56, %v615_v41 }
  0xd0   : > { %v341_v63 = vpop.xlane.xlu0 %340  ;;  %v414_v18 = vmul.f32 0.00390625, %v362_v54  ;;  %v556_v54 = vrot.slane %v406_v34, %v1648_v35 }
  0xd1   : > { %v407_v10 = vmul.f32 0.00390625, %v341_v63 }
  0xd2   : > { %v595_v45 = vrot.slane %v414_v18, %v1648_v35  ;;  %v557_v38 = vsel %vm513_vm8, %v556_v54, %v552_v59 }
  0xd3   : > { %v320_v46 = vpop.xlane.xlu1 %319  ;;  %v561_v44 = vrot.slane %v407_v10, %v1651_v55 }
  0xd4   : > { %v383_v25 = vpop.xlane.xlu0 %382  ;;  %v400_v63 = vmul.f32 0.00390625, %v320_v46  ;;  %v519_v46 = vrot.slane %v399_v17, %v1651_v55  ;;  %v596_v50 = vsel %vm513_vm8, %v595_v45, %v591_v13 }
  0xd5   : > { %v421_v30 = vmul.f32 0.00390625, %v383_v25  ;;  %v562_v34 = vsel %vm520_vm9, %v561_v44, %v557_v38 }
  0xd6   : > { %v526_v58 = vrot.slane %v400_v63, %v1670_v6  ;;  %v521_v42 = vsel %vm520_vm9, %v519_v46, %v514_v7 }
  0xd7   : > { %v365_v33 = vpop.xlane.xlu1 %364  ;;  %v629_v23 = vrot.slane %v421_v30, %v1643_v57  ;;  %v625_v57 = vsel %vm499_vm6, %v624_v52, %v620_v51 }
  0xd8   : > { %v344_v40 = vpop.xlane.xlu0 %343  ;;  %v415_v31 = vmul.f32 0.00390625, %v365_v33 }
  0xd9   : > { %v408_v3 = vmul.f32 0.00390625, %v344_v40 }
  0xda   : > { %v600_v25 = vrot.slane %v415_v31, %v1651_v55  ;;  %v528_v31 = vsel %vm527_vm10, %v526_v58, %v521_v42  ;;  %v948_v58 = vsub.s32 3, %v1622_v47 }
  0xdb   : > { %v368_v16 = vpop.xlane.xlu1 %367  ;;  %v566_v5 = vrot.slane %v408_v3, %v1670_v6 }
  0xdc   : > { %v416_v43 = vmul.f32 0.00390625, %v368_v16  ;;  %v386_v24 = vpop.xlane.xlu0 %385  ;;  %v601_v53 = vsel %vm520_vm9, %v600_v25, %v596_v50 }
  0xdd   : > { %v422_v11 = vmul.f32 0.00390625, %v386_v24  ;;  %v567_v18 = vsel %vm527_vm10, %v566_v5, %v562_v34  ;;  %v1181_v24 = vld [vmem:[%s1878_s4] ss:$0 sm:$0xff]  ;;  %v843_v5 = vsub.s32 0, %v1622_v47 }
  0xde   : > { %v605_v32 = vrot.slane %v416_v43, %v1670_v6  ;;  %v647_v19 = vsel %vm646_vm11, %v567_v18, %v528_v31  ;;  %v1972_v31 = vld [vmem:[#allocation4_spill] sm:$0xff] }
  0xdf   : > { %v392_v22 = vpop.xlane.xlu1 %391  ;;  %v634_v33 = vrot.slane %v422_v11, %v1648_v35  ;;  %v630_v35 = vsel %vm506_vm7, %v629_v23, %v625_v57  ;;  %v878_v23 = vsub.s32 1, %v1622_v47 }
  0xe0   : > { %v389_v20 = vpop.xlane.xlu0 %388  ;;  %v424_v39 = vmul.f32 0.00390625, %v392_v22  ;;  %v606_v21 = vsel %vm527_vm10, %v605_v32, %v601_v53  ;;  %v913_v22 = vsub.s32 2, %v1622_v47 }
  0xe1   : > { %v423_v40 = vmul.f32 0.00390625, %v389_v20  ;;  %v635_v3 = vsel %vm513_vm8, %v634_v33, %v630_v35 }
  0xe2   : > { %v644_v10 = vrot.slane %v424_v39, %v1670_v6  ;;  %v649_v6 = vsel %vm648_vm12, %v606_v21, %v647_v19 }
  0xe3   : > { %v639_v41 = vrot.slane %v423_v40, %v1651_v55  ;;  %v1178_v55 = vld [vmem:[%s1876_s2] ss:$0 sm:$0xff] }
  0xe5   : > { %v640_v62 = vsel %vm520_vm9, %v639_v41, %v635_v3 }
  0xe6   : > { %v645_v17 = vsel %vm527_vm10, %v644_v10, %v640_v62  ;;  %v1973_v62 = vld [vmem:[#allocation2_spill] sm:$0xff] }
  0xe7   : > { %v651_v30 = vsel %vm650_vm13, %v645_v17, %v649_v6  ;;  %v1974_v17 = vld [vmem:[#allocation3_spill] sm:$0xff] }
  0xe8   : > { %1209 = vmatmul.mubr.msk.f32.vlgmr.msra.gmra.mrb[0].mxu0 %vm652_vm0, %v651_v30  ;;  %v1975_v6 = vld [vmem:[#allocation19_spill] sm:$0xff]  ;;  %v1976_v30 = vld [vmem:[#allocation20_spill] sm:$0xff] }
 0x1bb   : > { %v724_v16 = vpop.f32.mrb[0].mxu0 }
 0x1bc   : > { %v725_v59 = vadd.f32 %v1178_v55, %v724_v16  ;;  %v1210_v54 = vpop.f32.mrb[1].mxu0 }
 0x1be   : > { %vm728_vm14 = vcmp.gt.f32.partialorder %v725_v59, 0.0  ;;  %v729_v63 = vmul.f32 0.01, %v725_v59 }
 0x1c0   : > { %v730_v43 = vsel %vm728_vm14, %v725_v59, %v729_v63  ;;  %v1977_v59 = vld [vmem:[#allocation9_spill] sm:$0xff]  ;;  %v1978_v63 = vld [vmem:[#allocation10_spill] sm:$0xff] }
 0x1c1   : > { %1228 = vmatmul.mubr.msk.f32.vlgmr.msra.gmra.mrb[0].mxu1 %vm737_vm2, %v730_v43 }
 0x294   : > { %v831_v56 = vpop.f32.mrb[0].mxu1 }
 0x295   : > { %v832_v45 = vadd.f32 %v1181_v24, %v831_v56  ;;  %v1229_v44 = vpop.f32.mrb[1].mxu1  ;;  %v1979_v24 = vld [vmem:[#allocation31_spill] sm:$0xff] }
 0x297   : > { %v835_v11 = vsub.f32 0.0, %v832_v45  ;;  %v1980_v45 = vld [vmem:[#allocation32_spill] sm:$0xff] }
 0x299   : > { %v836_v7 = vmul.f32 1.442695, %v835_v11 }
 0x29b   : > { %1257 = vpow2.f32 %v836_v7 }
 0x2a5   : > { %v1258_v52 = vpop.eup %1257 }
 0x2a6   : > { %v838_v25 = vadd.f32 1.0, %v1258_v52  ;;  %v1981_v52 = vld [vmem:[#allocation25_spill] sm:$0xff] }
 0x2a8   : > { %1259 = vrcp.f32 %v838_v25 }
 0x2b2   : > { %v1260_v13 = vpop.eup %1259 }
 0x2b3   : > { %v844_v46 = vrot.slane %v1260_v13, %v843_v5  ;;  %v879_v32 = vrot.slane %v1260_v13, %v878_v23  ;;  %v914_v38 = vrot.slane %v1260_v13, %v913_v22  ;;  %v949_v33 = vrot.slane %v1260_v13, %v948_v58  ;;  %v1982_v5 = vld [vmem:[#allocation26_spill] sm:$0xff] }
 0x2b5   : > { %850 = vbcast.lane.b32.xlu1 %v844_v46, 264  ;;  %846 = vbcast.lane.b32.xlu0 %v844_v46, 256 }
 0x2b9   : > { %854 = vbcast.lane.b32.xlu1 %v844_v46, 272  ;;  %862 = vbcast.lane.b32.xlu0 %v844_v46, 288 }
 0x2bd   : > { %858 = vbcast.lane.b32.xlu1 %v844_v46, 280  ;;  %870 = vbcast.lane.b32.xlu0 %v844_v46, 304 }
 0x2c1   : > { %866 = vbcast.lane.b32.xlu1 %v844_v46, 296  ;;  %881 = vbcast.lane.b32.xlu0 %v879_v32, 256 }
 0x2c5   : > { %874 = vbcast.lane.b32.xlu1 %v844_v46, 312  ;;  %889 = vbcast.lane.b32.xlu0 %v879_v32, 272  ;;  %v1983_v46 = vld [vmem:[#allocation7_spill] sm:$0xff] }
 0x2c9   : > { %885 = vbcast.lane.b32.xlu1 %v879_v32, 264  ;;  %897 = vbcast.lane.b32.xlu0 %v879_v32, 288 }
 0x2cd   : > { %893 = vbcast.lane.b32.xlu1 %v879_v32, 280  ;;  %905 = vbcast.lane.b32.xlu0 %v879_v32, 304 }
 0x2d1   : > { %901 = vbcast.lane.b32.xlu1 %v879_v32, 296  ;;  %916 = vbcast.lane.b32.xlu0 %v914_v38, 256 }
 0x2d5   : > { %909 = vbcast.lane.b32.xlu1 %v879_v32, 312  ;;  %924 = vbcast.lane.b32.xlu0 %v914_v38, 272  ;;  %v1984_v32 = vld [vmem:[#allocation8_spill] sm:$0xff] }
 0x2d9   : > { %920 = vbcast.lane.b32.xlu1 %v914_v38, 264  ;;  %932 = vbcast.lane.b32.xlu0 %v914_v38, 288 }
 0x2dd   : > { %928 = vbcast.lane.b32.xlu1 %v914_v38, 280  ;;  %940 = vbcast.lane.b32.xlu0 %v914_v38, 304 }
 0x2e1   : > { %936 = vbcast.lane.b32.xlu1 %v914_v38, 296  ;;  %951 = vbcast.lane.b32.xlu0 %v949_v33, 256 }
 0x2e5   : > { %944 = vbcast.lane.b32.xlu1 %v914_v38, 312  ;;  %959 = vbcast.lane.b32.xlu0 %v949_v33, 272 }
 0x2e9   : > { %955 = vbcast.lane.b32.xlu1 %v949_v33, 264  ;;  %967 = vbcast.lane.b32.xlu0 %v949_v33, 288 }
 0x2ed   : > { %963 = vbcast.lane.b32.xlu1 %v949_v33, 280  ;;  %975 = vbcast.lane.b32.xlu0 %v949_v33, 304 }
 0x2f1   : > { %971 = vbcast.lane.b32.xlu1 %v949_v33, 296 }
 0x2f5   : > { %979 = vbcast.lane.b32.xlu1 %v949_v33, 312  ;;  %v1985_v33 = vld [vmem:[#allocation37_spill] sm:$0xff] }
 0x327   : > { %v851_v47 = vpop.permute.xlu1 %850  ;;  %v847_v20 = vpop.permute.xlu0 %846 }
 0x328   : > { %v983_v39 = vmul.f32 %v851_v47, %v1343_v8  ;;  %v984_v51 = vmul.f32 %v851_v47, %v1346_v9  ;;  %v981_v50 = vmul.f32 %v847_v20, %v1327_v2  ;;  %v982_v34 = vmul.f32 %v847_v20, %v1332_v4  ;;  %v1986_v20 = vld [vmem:[#allocation38_spill] sm:$0xff] }
 0x32a   : > { %1047 = vst [vmem:[%s1741_s27 + $0x10] sm:$0xff] %v983_v39  ;;  %1048 = vst [vmem:[%s1741_s27 + $0x18] sm:$0xff] %v984_v51  ;;  %v1987_v51 = vld [vmem:[#allocation13_spill] sm:$0xff] }
 0x32b   : > { %1045 = vst [vmem:[%s1741_s27] sm:$0xff] %v981_v50  ;;  %1046 = vst [vmem:[%s1741_s27 + $0x8] sm:$0xff] %v982_v34  ;;  %v855_v40 = vpop.permute.xlu1 %854  ;;  %v863_v57 = vpop.permute.xlu0 %862  ;;  %v1988_v34 = vld [vmem:[#allocation14_spill] sm:$0xff] }
 0x32c   : > { %v985_v53 = vmul.f32 %v855_v40, %v1359_v14  ;;  %v986_v8 = vmul.f32 %v855_v40, %v1362_v15  ;;  %v989_v9 = vmul.f32 %v863_v57, %v1417_v36  ;;  %v990_v2 = vmul.f32 %v863_v57, %v1420_v37 }
 0x32e   : > { %1049 = vst [vmem:[%s1741_s27 + $0x20] sm:$0xff] %v985_v53  ;;  %1050 = vst [vmem:[%s1741_s27 + $0x28] sm:$0xff] %v986_v8  ;;  %v1989_v8 = vld [vmem:[#allocation5_spill] sm:$0xff] }
 0x32f   : > { %1053 = vst [vmem:[%s1741_s27 + $0x40] sm:$0xff] %v989_v9  ;;  %1054 = vst [vmem:[%s1741_s27 + $0x48] sm:$0xff] %v990_v2  ;;  %v859_v4 = vpop.permute.xlu1 %858  ;;  %v871_v18 = vpop.permute.xlu0 %870  ;;  %v1990_v2 = vld [vmem:[#allocation6_spill] sm:$0xff] }
 0x330   : > { %v987_v10 = vmul.f32 %v859_v4, %v1391_v26  ;;  %v988_v14 = vmul.f32 %v859_v4, %v1394_v27  ;;  %v993_v15 = vmul.f32 %v871_v18, %v1481_v60  ;;  %v994_v36 = vmul.f32 %v871_v18, %v1484_v61  ;;  %v1991_v18 = vld [vmem:[#allocation23_spill] sm:$0xff] }
 0x332   : > { %1051 = vst [vmem:[%s1741_s27 + $0x30] sm:$0xff] %v987_v10  ;;  %1052 = vst [vmem:[%s1741_s27 + $0x38] sm:$0xff] %v988_v14  ;;  %v1992_v14 = vld [vmem:[#allocation24_spill] sm:$0xff] }
 0x333   : > { %1057 = vst [vmem:[%s1741_s27 + $0x60] sm:$0xff] %v993_v15  ;;  %1058 = vst [vmem:[%s1741_s27 + $0x68] sm:$0xff] %v994_v36  ;;  %v867_v37 = vpop.permute.xlu1 %866  ;;  %v882_v42 = vpop.permute.xlu0 %881 }
 0x334   : > { %v991_v35 = vmul.f32 %v867_v37, %v1449_v48  ;;  %v992_v26 = vmul.f32 %v867_v37, %v1452_v49  ;;  %v997_v27 = vmul.f32 %v882_v42, %v1321_v0  ;;  %v998_v60 = vmul.f32 %v882_v42, %v1324_v1  ;;  %v1993_v42 = vld [vmem:[#allocation17_spill] sm:$0xff] }
 0x336   : > { %1055 = vst [vmem:[%s1741_s27 + $0x50] sm:$0xff] %v991_v35  ;;  %1056 = vst [vmem:[%s1741_s27 + $0x58] sm:$0xff] %v992_v26  ;;  %v1994_v26 = vld [vmem:[#allocation18_spill] sm:$0xff] }
 0x337   : > { %1061 = vst [vmem:[%s1741_s27 + $0x80] sm:$0xff] %v997_v27  ;;  %1062 = vst [vmem:[%s1741_s27 + $0x88] sm:$0xff] %v998_v60  ;;  %v875_v61 = vpop.permute.xlu1 %874  ;;  %v890_v21 = vpop.permute.xlu0 %889  ;;  %v1995_v60 = vld [vmem:[#allocation35_spill] sm:$0xff] }
 0x338   : > { %v995_v41 = vmul.f32 %v875_v61, %v1513_v28  ;;  %v996_v48 = vmul.f32 %v875_v61, %v1516_v29  ;;  %v1001_v49 = vmul.f32 %v890_v21, %v1353_v12  ;;  %v1002_v0 = vmul.f32 %v890_v21, %v1972_v31  ;;  %v1996_v21 = vld [vmem:[#allocation36_spill] sm:$0xff]  ;;  %v1997_v31 = vld [vmem:[#allocation29_spill] sm:$0xff] }
 0x33a   : > { %1059 = vst [vmem:[%s1741_s27 + $0x70] sm:$0xff] %v995_v41  ;;  %1060 = vst [vmem:[%s1741_s27 + $0x78] sm:$0xff] %v996_v48 }
 0x33b   : > { %1065 = vst [vmem:[%s1741_s27 + $0xa0] sm:$0xff] %v1001_v49  ;;  %1066 = vst [vmem:[%s1741_s27 + $0xa8] sm:$0xff] %v1002_v0  ;;  %v886_v1 = vpop.permute.xlu1 %885  ;;  %v898_v3 = vpop.permute.xlu0 %897 }
 0x33c   : > { %v999_v19 = vmul.f32 %v886_v1, %v1973_v62  ;;  %v1000_v28 = vmul.f32 %v886_v1, %v1974_v17  ;;  %v1005_v29 = vmul.f32 %v898_v3, %v1975_v6  ;;  %v1006_v12 = vmul.f32 %v898_v3, %v1976_v30  ;;  %v1998_v1 = vld [vmem:[#allocation30_spill] sm:$0xff]  ;;  %v1999_v62 = vld [vmem:[#allocation11_spill] sm:$0xff]  ;;  %v2000_v17 = vld [vmem:[#allocation12_spill] sm:$0xff] }
 0x33d   : > { %v2001_v30 = vld [vmem:[#allocation39_spill] sm:$0xff] }
 0x33e   : > { %1063 = vst [vmem:[%s1741_s27 + $0x90] sm:$0xff] %v999_v19  ;;  %1064 = vst [vmem:[%s1741_s27 + $0x98] sm:$0xff] %v1000_v28 }
 0x33f   : > { %1069 = vst [vmem:[%s1741_s27 + $0xc0] sm:$0xff] %v1005_v29  ;;  %1070 = vst [vmem:[%s1741_s27 + $0xc8] sm:$0xff] %v1006_v12  ;;  %v894_v55 = vpop.permute.xlu1 %893  ;;  %v906_v16 = vpop.permute.xlu0 %905 }
 0x340   : > { %v1003_v54 = vmul.f32 %v894_v55, %v1977_v59  ;;  %v1004_v43 = vmul.f32 %v894_v55, %v1978_v63  ;;  %v1009_v56 = vmul.f32 %v906_v16, %v1979_v24  ;;  %v1010_v44 = vmul.f32 %v906_v16, %v1980_v45  ;;  %v2002_v55 = vld [vmem:[#allocation40_spill] sm:$0xff]  ;;  %v2003_v59 = vld [vmem:[#allocation21_spill] sm:$0xff]  ;;  %v2004_v63 = vld [vmem:[#allocation22_spill] sm:$0xff] }
 0x341   : > { %v2005_v45 = vld [vmem:[#allocation15_spill] sm:$0xff] }
 0x342   : > { %1067 = vst [vmem:[%s1741_s27 + $0xb0] sm:$0xff] %v1003_v54  ;;  %1068 = vst [vmem:[%s1741_s27 + $0xb8] sm:$0xff] %v1004_v43 }
 0x343   : > { %1073 = vst [vmem:[%s1741_s27 + $0xe0] sm:$0xff] %v1009_v56  ;;  %1074 = vst [vmem:[%s1741_s27 + $0xe8] sm:$0xff] %v1010_v44  ;;  %v902_v11 = vpop.permute.xlu1 %901  ;;  %v917_v7 = vpop.permute.xlu0 %916 }
 0x344   : > { %v1007_v25 = vmul.f32 %v902_v11, %v1981_v52  ;;  %v1008_v13 = vmul.f32 %v902_v11, %v1982_v5  ;;  %v1013_v23 = vmul.f32 %v917_v7, %v1983_v46  ;;  %v1014_v22 = vmul.f32 %v917_v7, %v1984_v32  ;;  %v2006_v11 = vld [vmem:[#allocation16_spill] sm:$0xff]  ;;  %v2007_v52 = vld [vmem:[#allocation33_spill] sm:$0xff]  ;;  %v2008_v5 = vld [vmem:[#allocation34_spill] sm:$0xff] }
 0x345   : > { %v2009_v32 = vld [vmem:[#allocation27_spill] sm:$0xff] }
 0x346   : > { %1071 = vst [vmem:[%s1741_s27 + $0xd0] sm:$0xff] %v1007_v25  ;;  %1072 = vst [vmem:[%s1741_s27 + $0xd8] sm:$0xff] %v1008_v13 }
 0x347   : > { %1077 = vst [vmem:[%s1741_s27 + $0x100] sm:$0xff] %v1013_v23  ;;  %1078 = vst [vmem:[%s1741_s27 + $0x108] sm:$0xff] %v1014_v22  ;;  %v910_v38 = vpop.permute.xlu1 %909  ;;  %v925_v58 = vpop.permute.xlu0 %924 }
 0x348   : > { %v1011_v47 = vmul.f32 %v910_v38, %v1985_v33  ;;  %v1012_v39 = vmul.f32 %v910_v38, %v1986_v20  ;;  %v1017_v50 = vmul.f32 %v925_v58, %v1987_v51  ;;  %v1018_v40 = vmul.f32 %v925_v58, %v1988_v34  ;;  %v2010_v38 = vld [vmem:[#allocation28_spill] sm:$0xff]  ;;  %v2011_v33 = vld [vmem:[#allocation45_spill] sm:$0xff]  ;;  %v2012_v20 = vld [vmem:[#allocation46_spill] sm:$0xff] }
 0x34a   : > { %1075 = vst [vmem:[%s1741_s27 + $0xf0] sm:$0xff] %v1011_v47  ;;  %1076 = vst [vmem:[%s1741_s27 + $0xf8] sm:$0xff] %v1012_v39 }
 0x34b   : > { %1081 = vst [vmem:[%s1741_s27 + $0x120] sm:$0xff] %v1017_v50  ;;  %1082 = vst [vmem:[%s1741_s27 + $0x128] sm:$0xff] %v1018_v40  ;;  %v921_v57 = vpop.permute.xlu1 %920  ;;  %v933_v53 = vpop.permute.xlu0 %932  ;;  %v2013_v50 = vld [vmem:[#allocation41_spill] sm:$0xff]  ;;  %v2014_v40 = vld [vmem:[#allocation42_spill] sm:$0xff] }
 0x34c   : > { %v1015_v9 = vmul.f32 %v921_v57, %v1989_v8  ;;  %v1016_v4 = vmul.f32 %v921_v57, %v1990_v2  ;;  %v1021_v10 = vmul.f32 %v933_v53, %v1991_v18  ;;  %v1022_v15 = vmul.f32 %v933_v53, %v1992_v14  ;;  %v2015_v8 = vld [vmem:[#allocation43_spill] sm:$0xff]  ;;  %v2016_v2 = vld [vmem:[#allocation44_spill] sm:$0xff] }
 0x34e   : > { %1079 = vst [vmem:[%s1741_s27 + $0x110] sm:$0xff] %v1015_v9  ;;  %1080 = vst [vmem:[%s1741_s27 + $0x118] sm:$0xff] %v1016_v4 }
 0x34f   : > { %1085 = vst [vmem:[%s1741_s27 + $0x140] sm:$0xff] %v1021_v10  ;;  %1086 = vst [vmem:[%s1741_s27 + $0x148] sm:$0xff] %v1022_v15  ;;  %v929_v36 = vpop.permute.xlu1 %928  ;;  %v941_v37 = vpop.permute.xlu0 %940 }
 0x350   : > { %v1019_v35 = vmul.f32 %v929_v36, %v1993_v42  ;;  %v1020_v27 = vmul.f32 %v929_v36, %v1994_v26  ;;  %v1025_v61 = vmul.f32 %v941_v37, %v1995_v60  ;;  %v1026_v41 = vmul.f32 %v941_v37, %v1996_v21 }
 0x352   : > { %1083 = vst [vmem:[%s1741_s27 + $0x130] sm:$0xff] %v1019_v35  ;;  %1084 = vst [vmem:[%s1741_s27 + $0x138] sm:$0xff] %v1020_v27 }
 0x353   : > { %1089 = vst [vmem:[%s1741_s27 + $0x160] sm:$0xff] %v1025_v61  ;;  %1090 = vst [vmem:[%s1741_s27 + $0x168] sm:$0xff] %v1026_v41  ;;  %v937_v48 = vpop.permute.xlu1 %936  ;;  %v952_v49 = vpop.permute.xlu0 %951 }
 0x354   : > { %v1023_v0 = vmul.f32 %v937_v48, %v1997_v31  ;;  %v1024_v3 = vmul.f32 %v937_v48, %v1998_v1  ;;  %v1029_v19 = vmul.f32 %v952_v49, %v1999_v62  ;;  %v1030_v28 = vmul.f32 %v952_v49, %v2000_v17 }
 0x356   : > { %1087 = vst [vmem:[%s1741_s27 + $0x150] sm:$0xff] %v1023_v0  ;;  %1088 = vst [vmem:[%s1741_s27 + $0x158] sm:$0xff] %v1024_v3 }
 0x357   : > { %1093 = vst [vmem:[%s1741_s27 + $0x180] sm:$0xff] %v1029_v19  ;;  %1094 = vst [vmem:[%s1741_s27 + $0x188] sm:$0xff] %v1030_v28  ;;  %v945_v6 = vpop.permute.xlu1 %944  ;;  %v960_v29 = vpop.permute.xlu0 %959 }
 0x358   : > { %v1027_v12 = vmul.f32 %v945_v6, %v2001_v30  ;;  %v1028_v16 = vmul.f32 %v945_v6, %v2002_v55  ;;  %v1033_v54 = vmul.f32 %v960_v29, %v2003_v59  ;;  %v1034_v43 = vmul.f32 %v960_v29, %v2004_v63 }
 0x35a   : > { %1091 = vst [vmem:[%s1741_s27 + $0x170] sm:$0xff] %v1027_v12  ;;  %1092 = vst [vmem:[%s1741_s27 + $0x178] sm:$0xff] %v1028_v16 }
 0x35b   : > { %1097 = vst [vmem:[%s1741_s27 + $0x1a0] sm:$0xff] %v1033_v54  ;;  %1098 = vst [vmem:[%s1741_s27 + $0x1a8] sm:$0xff] %v1034_v43  ;;  %v956_v24 = vpop.permute.xlu1 %955  ;;  %v968_v56 = vpop.permute.xlu0 %967 }
 0x35c   : > { %v1031_v44 = vmul.f32 %v956_v24, %v2005_v45  ;;  %v1032_v7 = vmul.f32 %v956_v24, %v2006_v11  ;;  %v1037_v25 = vmul.f32 %v968_v56, %v2007_v52  ;;  %v1038_v13 = vmul.f32 %v968_v56, %v2008_v5 }
 0x35e   : > { %1095 = vst [vmem:[%s1741_s27 + $0x190] sm:$0xff] %v1031_v44  ;;  %1096 = vst [vmem:[%s1741_s27 + $0x198] sm:$0xff] %v1032_v7 }
 0x35f   : > { %1101 = vst [vmem:[%s1741_s27 + $0x1c0] sm:$0xff] %v1037_v25  ;;  %1102 = vst [vmem:[%s1741_s27 + $0x1c8] sm:$0xff] %v1038_v13  ;;  %v964_v46 = vpop.permute.xlu1 %963  ;;  %v976_v23 = vpop.permute.xlu0 %975 }
 0x360   : > { %v1035_v22 = vmul.f32 %v964_v46, %v2009_v32  ;;  %v1036_v58 = vmul.f32 %v964_v46, %v2010_v38  ;;  %v1041_v47 = vmul.f32 %v976_v23, %v2011_v33  ;;  %v1042_v39 = vmul.f32 %v976_v23, %v2012_v20 }
 0x362   : > { %1099 = vst [vmem:[%s1741_s27 + $0x1b0] sm:$0xff] %v1035_v22  ;;  %1100 = vst [vmem:[%s1741_s27 + $0x1b8] sm:$0xff] %v1036_v58 }
 0x363   : > { %1105 = vst [vmem:[%s1741_s27 + $0x1e0] sm:$0xff] %v1041_v47  ;;  %1106 = vst [vmem:[%s1741_s27 + $0x1e8] sm:$0xff] %v1042_v39  ;;  %v972_v51 = vpop.permute.xlu1 %971 }
 0x364   : > { %v1039_v34 = vmul.f32 %v972_v51, %v2013_v50  ;;  %v1040_v57 = vmul.f32 %v972_v51, %v2014_v40 }
 0x366   : > { %1103 = vst [vmem:[%s1741_s27 + $0x1d0] sm:$0xff] %v1039_v34  ;;  %1104 = vst [vmem:[%s1741_s27 + $0x1d8] sm:$0xff] %v1040_v57 }
 0x367   : > { %v980_v53 = vpop.permute.xlu1 %979 }
 0x368   : > { %v1043_v9 = vmul.f32 %v980_v53, %v2015_v8  ;;  %v1044_v4 = vmul.f32 %v980_v53, %v2016_v2 }
 0x36a   : > { %1107 = vst [vmem:[%s1741_s27 + $0x1f0] sm:$0xff] %v1043_v9  ;;  %1108 = vst [vmem:[%s1741_s27 + $0x1f8] sm:$0xff] %v1044_v4 }
 0x36b PF: > { %s15_s18 = sadd.s32 1, %s1267_s18  }
 0x36c   : > { %p12_p4 = scmp.ge.s32.totalorder %s15_s18, 4  }
 0x36e   :  { %14 = sbr.rel (!%p12_p4) target bundleno = 1 (0x1), region = 70 }

</bundles_post_ra>
